<compile_context>
chip_gen: v5e
topology: v5e:2x2
jax: 0.10.0
libtpu: 0.0.40
codegen_flags: <defaults>
</compile_context>

<pallas_src>
import functools

import jax
import jax.numpy as jnp
from jax.experimental import pallas as pl
from jax.experimental.pallas import tpu as pltpu


def _row_toeplitz(w_row, W):
    """Banded weights for one kernel row: (W*Cin, W*Cout) block-Toeplitz.

    T[j*Cin+ci, w*Cout+co] = w_row[dx, ci, co] with dx = j - w + 1 in {0,1,2},
    else 0.  The dx taps and the width-direction zero padding live entirely in
    the band structure, so the kernel needs no im2col buffer at all.
    """
    _, cin, cout = w_row.shape
    j = jnp.arange(W)[:, None]   # input column index
    w = jnp.arange(W)[None, :]   # output column index
    t = jnp.zeros((W, cin, W, cout), jnp.float32)
    for dx in range(3):
        mask = (j == (w + dx - 1)).astype(jnp.float32)
        t = t + mask[:, None, :, None] * w_row[dx].astype(jnp.float32)[None, :, None, :]
    return t.reshape(W * cin, W * cout)


def _proj_toeplitz(ws, W):
    """Block-diagonal weights for the 1x1 projection shortcut."""
    cin, cout = ws.shape
    eye = jnp.eye(W, dtype=jnp.float32)
    t = eye[:, None, :, None] * ws.astype(jnp.float32)[None, :, None, :]
    return t.reshape(W * cin, W * cout)


def _resblock_kernel(x_ref, t10_ref, t11_ref, t12_ref,
                     t20_ref, t21_ref, t22_ref, g_ref, bn_ref,
                     o_ref, pad1_ref, pad2_ref, *, W, has_projection, eps):
    N, hp2, wcin = pad1_ref.shape
    H = hp2 - 2
    NH = N * H
    wcout = o_ref.shape[-1]
    inv_p = 1.0 / float(NH * W)

    def batchnorm(y, row):
        # Training-mode BN (batch stats, biased variance) on the
        # (w, channel)-interleaved lane layout.  Column sums are folded to
        # per-channel totals (already broadcast back across lanes) with one
        # tiny constant matmul against g_ref; gamma/beta are pre-tiled.
        s = jnp.sum(y, axis=0, keepdims=True)
        s2 = jnp.sum(y * y, axis=0, keepdims=True)
        folded = jnp.dot(jnp.concatenate([s, s2], axis=0), g_ref[...],
                         preferred_element_type=jnp.float32)
        mean = folded[0:1, :] * inv_p
        var = jnp.maximum(folded[1:2, :] * inv_p - mean * mean, 0.0)  # clamp
        scale = bn_ref[row:row + 1, :] * jax.lax.rsqrt(var + eps)
        shift = bn_ref[row + 1:row + 2, :] - mean * scale
        return y * scale + shift

    # ---- conv1 (3x3, pad=1): three banded matmuls, one per kernel row dy ----
    # Only the top/bottom halo rows need zeroing; every interior row of the
    # (uninitialized) scratch is fully written before it is read.
    pad1_ref[:, 0:1, :] = jnp.zeros((N, 1, wcin), pad1_ref.dtype)
    pad1_ref[:, H + 1:H + 2, :] = jnp.zeros((N, 1, wcin), pad1_ref.dtype)
    pad1_ref[:, 1:H + 1, :] = x_ref[...]

    x_rows = x_ref[...].reshape(NH, wcin)            # dy = 1 operand (no reload)
    up = pad1_ref[:, 0:H, :].reshape(NH, wcin)       # dy = 0 (row above)
    dn = pad1_ref[:, 2:H + 2, :].reshape(NH, wcin)   # dy = 2 (row below)

    y1 = jnp.dot(up, t10_ref[...], preferred_element_type=jnp.float32)
    y1 = y1 + jnp.dot(dn, t12_ref[...], preferred_element_type=jnp.float32)
    mid = jnp.dot(x_rows, t11_ref[...], preferred_element_type=jnp.float32)
    if has_projection:
        # dy=1 RHS carries [conv1 row | 1x1 projection]; split on a lane-tile
        # boundary.  The widened RHS fills the 256-wide MXU on v6e/v7x.
        y1 = y1 + mid[:, :wcout]
        sc = batchnorm(mid[:, wcout:], 4)
    else:
        y1 = y1 + mid
        sc = x_rows.astype(jnp.float32)              # identity shortcut

    h1 = jnp.maximum(batchnorm(y1, 0), 0.0)
    h1_bf = h1.astype(jnp.bfloat16)

    # ---- conv2 (3x3, pad=1) ----
    pad2_ref[:, 0:1, :] = jnp.zeros((N, 1, wcout), pad2_ref.dtype)
    pad2_ref[:, H + 1:H + 2, :] = jnp.zeros((N, 1, wcout), pad2_ref.dtype)
    pad2_ref[:, 1:H + 1, :] = h1_bf.reshape(N, H, wcout)

    up2 = pad2_ref[:, 0:H, :].reshape(NH, wcout)
    dn2 = pad2_ref[:, 2:H + 2, :].reshape(NH, wcout)

    y2 = jnp.dot(up2, t20_ref[...], preferred_element_type=jnp.float32)
    y2 = y2 + jnp.dot(h1_bf, t21_ref[...], preferred_element_type=jnp.float32)
    y2 = y2 + jnp.dot(dn2, t22_ref[...], preferred_element_type=jnp.float32)
    y2 = batchnorm(y2, 2)

    # Lane-dense, unpadded f32 output (only real channels are written back).
    o_ref[...] = jnp.maximum(y2 + sc, 0.0)


def resblock_forward(x_nchw, params, *, stride=1):
    if stride != 1:
        # TODO(synk): stride > 1 spatial subsampling not implemented in-kernel.
        raise NotImplementedError("stride != 1 not supported by this kernel")

    w1, w2, ws, bn = params["w1"], params["w2"], params["ws"], params["bn"]
    N, Cin, H, W = x_nchw.shape
    Cout = w1.shape[-1]
    has_projection = (Cin != Cout) or (stride != 1)

    # NCHW -> row-flattened NHWC (N, H, W*Cin) on the real bytes only; the
    # final reshape is free (same buffer) and no channel padding hits HBM.
    x = jnp.transpose(x_nchw, (0, 2, 3, 1)).reshape(N, H, W * Cin)
    x = x.astype(jnp.bfloat16)

    # Banded (block-Toeplitz over W) conv weights, one matrix per kernel row.
    t1 = [_row_toeplitz(w1[dy], W).astype(jnp.bfloat16) for dy in range(3)]
    t2 = [_row_toeplitz(w2[dy], W).astype(jnp.bfloat16) for dy in range(3)]
    if has_projection:
        # Fuse the 1x1 projection into conv1's dy=1 matmul (RHS -> 2*W*Cout).
        t1[1] = jnp.concatenate(
            [t1[1], _proj_toeplitz(ws, W).astype(jnp.bfloat16)], axis=1)

    # Per-channel fold matrix for BN stats over the w-interleaved lane layout,
    # plus pre-tiled (gamma, beta) rows: (6, W*Cout).
    g = jnp.tile(jnp.eye(Cout, dtype=jnp.float32), (W, W))
    bn_t = jnp.tile(bn.astype(jnp.float32), (1, W))

    args = [x, t1[0], t1[1], t1[2], t2[0], t2[1], t2[2], g, bn_t]

    # VMEM budget from the actual footprint (inputs + output + scratch) with
    # headroom, capped well below v7x's 64 MiB -- not a hard-coded 48 MiB.
    out_bytes = N * H * W * Cout * 4
    scratch_bytes = N * (H + 2) * W * (Cin + Cout) * 2
    footprint = sum(int(a.size) * a.dtype.itemsize for a in args)
    footprint += out_bytes + scratch_bytes
    try:
        vmem_cap = pltpu.get_tpu_info().vmem_capacity_bytes
    except Exception:
        vmem_cap = 64 * 1024 * 1024          # conservative: v7x per-core VMEM
    vmem_limit = int(min(max(4 * footprint, 16 * 1024 * 1024), vmem_cap // 2))

    kernel = functools.partial(_resblock_kernel, W=W,
                               has_projection=has_projection, eps=1e-5)
    out = pl.pallas_call(
        kernel,
        out_shape=jax.ShapeDtypeStruct((N * H, W * Cout), jnp.float32),
        in_specs=[pl.BlockSpec(memory_space=pltpu.MemorySpace.VMEM)] * len(args),
        out_specs=pl.BlockSpec(memory_space=pltpu.MemorySpace.VMEM),
        scratch_shapes=[
            pltpu.VMEM((N, H + 2, W * Cin), jnp.bfloat16),    # conv1 row-halo
            pltpu.VMEM((N, H + 2, W * Cout), jnp.bfloat16),   # conv2 row-halo
        ],
        compiler_params=pltpu.CompilerParams(vmem_limit_bytes=vmem_limit),
    )(*args)

    # (N*H, W*Cout) -> NCHW; the reshape is free, the transpose moves real
    # bytes only (no padded channels).
    return jnp.transpose(out.reshape(N, H, W, Cout), (0, 3, 1, 2))


def init_params(key, in_channels, out_channels):
    # Deterministic synthetic parameters (shapes from ResBlock.__init__).
    k1, k2, k3, k4 = jax.random.split(key, 4)
    w1 = 0.2 * jax.random.normal(k1, (3, 3, in_channels, out_channels), jnp.float32)
    w2 = 0.2 * jax.random.normal(k2, (3, 3, out_channels, out_channels), jnp.float32)
    ws = 0.2 * jax.random.normal(k3, (in_channels, out_channels), jnp.float32)
    gb = 0.1 * jax.random.normal(k4, (6, out_channels), jnp.float32)
    # rows: gamma1, beta1, gamma2, beta2, gamma_sc, beta_sc (gammas ~ 1)
    bn = gb.at[0].add(1.0).at[2].add(1.0).at[4].add(1.0)
    return {"w1": w1, "w2": w2, "ws": ws, "bn": bn}


def ref_resblock(x_nchw, params, *, eps=1e-5):
    # Pure-JAX f32 reference (stride=1) for correctness checking.
    w1, w2, ws, bn = params["w1"], params["w2"], params["ws"], params["bn"]
    Cin, Cout = x_nchw.shape[1], w1.shape[-1]

    def conv(x, w_hwio, pad):
        w_oihw = jnp.transpose(w_hwio, (3, 2, 0, 1))
        return jax.lax.conv_general_dilated(
            x, w_oihw, (1, 1), ((pad, pad), (pad, pad)),
            dimension_numbers=("NCHW", "OIHW", "NCHW"))

    def bnorm(y, g, b):
        mean = jnp.mean(y, axis=(0, 2, 3), keepdims=True)
        var = jnp.mean((y - mean) ** 2, axis=(0, 2, 3), keepdims=True)
        return ((y - mean) / jnp.sqrt(var + eps) * g.reshape(1, -1, 1, 1)
                + b.reshape(1, -1, 1, 1))

    out = jax.nn.relu(bnorm(conv(x_nchw, w1, 1), bn[0], bn[1]))
    out = bnorm(conv(out, w2, 1), bn[2], bn[3])
    if Cin != Cout:
        sc = bnorm(conv(x_nchw, ws[None, None], 0), bn[4], bn[5])
    else:
        sc = x_nchw
    return jax.nn.relu(out + sc)


if __name__ == "__main__":
    key = jax.random.PRNGKey(0)
    kx1, kp1, kx2, kp2 = jax.random.split(key, 4)
    N, H, W = 2, 16, 16
    # Tolerances account for bf16 MXU operands vs the f32 reference.
    ATOL = RTOL = 5e-2

    # Config A: Cin != Cout -> projection (1x1 conv + BN) shortcut, fused
    # into conv1's dy=1 matmul.
    Cin, Cout = 4, 8
    x = jax.random.normal(kx1, (N, Cin, H, W), jnp.float32)
    params = init_params(kp1, Cin, Cout)
    out = jax.block_until_ready(resblock_forward(x, params))
    ref = ref_resblock(x, params)
    assert out.shape == (N, Cout, H, W), out.shape
    err = float(jnp.max(jnp.abs(out - ref)))
    assert jnp.allclose(out, ref, atol=ATOL, rtol=RTOL), err

    # Config B: Cin == Cout -> identity shortcut (no projection weight passed).
    C = 8
    x2 = jax.random.normal(kx2, (N, C, H, W), jnp.float32)
    params2 = init_params(kp2, C, C)
    out2 = jax.block_until_ready(resblock_forward(x2, params2))
    ref2 = ref_resblock(x2, params2)
    assert out2.shape == (N, C, H, W), out2.shape
    err2 = float(jnp.max(jnp.abs(out2 - ref2)))
    assert jnp.allclose(out2, ref2, atol=ATOL, rtol=RTOL), err2

    print("KERNEL_OK")
</pallas_src>

<mosaic_0001>
module attributes {stable_mosaic.version = 11 : i64} {
  func.func @_resblock_kernel(%arg0: memref<2x16x64xbf16, #tpu.memory_space<vmem>>, %arg1: memref<64x128xbf16, #tpu.memory_space<vmem>>, %arg2: memref<64x256xbf16, #tpu.memory_space<vmem>>, %arg3: memref<64x128xbf16, #tpu.memory_space<vmem>>, %arg4: memref<128x128xbf16, #tpu.memory_space<vmem>>, %arg5: memref<128x128xbf16, #tpu.memory_space<vmem>>, %arg6: memref<128x128xbf16, #tpu.memory_space<vmem>>, %arg7: memref<128x128xf32, #tpu.memory_space<vmem>>, %arg8: memref<6x128xf32, #tpu.memory_space<vmem>>, %arg9: memref<32x128xf32, #tpu.memory_space<vmem>>, %arg10: memref<2x18x64xbf16, #tpu.memory_space<vmem>>, %arg11: memref<2x18x128xbf16, #tpu.memory_space<vmem>>) attributes {dimension_semantics = [], scalar_prefetch = 0 : i64, scratch_operands = 2 : i64, tpu.core_type = #tpu.core_type<tc>} {
    %cst = arith.constant 0.000000e+00 : bf16
    %0 = vector.broadcast %cst : bf16 to vector<2x1x64xbf16>
    %c0 = arith.constant 0 : index
    %c0_0 = arith.constant 0 : index
    %c0_1 = arith.constant 0 : index
    %1 = vector.load %arg10[%c0, %c0_0, %c0_1] : memref<2x18x64xbf16, #tpu.memory_space<vmem>>, vector<2x1x64xbf16>
    tpu.vector_store %arg10[%c0, %c0_0, %c0_1], %0 {strides = array<i32>} : memref<2x18x64xbf16, #tpu.memory_space<vmem>>, vector<2x1x64xbf16>,
    %cst_2 = arith.constant 0.000000e+00 : bf16
    %2 = vector.broadcast %cst_2 : bf16 to vector<2x1x64xbf16>
    %c0_3 = arith.constant 0 : index
    %c17 = arith.constant 17 : index
    %c0_4 = arith.constant 0 : index
    %3 = vector.load %arg10[%c0_3, %c17, %c0_4] : memref<2x18x64xbf16, #tpu.memory_space<vmem>>, vector<2x1x64xbf16>
    tpu.vector_store %arg10[%c0_3, %c17, %c0_4], %2 {strides = array<i32>} : memref<2x18x64xbf16, #tpu.memory_space<vmem>>, vector<2x1x64xbf16>,
    %c0_5 = arith.constant 0 : index
    %c0_6 = arith.constant 0 : index
    %c0_7 = arith.constant 0 : index
    %4 = vector.load %arg0[%c0_5, %c0_6, %c0_7] : memref<2x16x64xbf16, #tpu.memory_space<vmem>>, vector<2x16x64xbf16>
    %c0_8 = arith.constant 0 : index
    %c1 = arith.constant 1 : index
    %c0_9 = arith.constant 0 : index
    %5 = vector.load %arg10[%c0_8, %c1, %c0_9] : memref<2x18x64xbf16, #tpu.memory_space<vmem>>, vector<2x16x64xbf16>
    tpu.vector_store %arg10[%c0_8, %c1, %c0_9], %4 {strides = array<i32>} : memref<2x18x64xbf16, #tpu.memory_space<vmem>>, vector<2x16x64xbf16>,
    %c0_10 = arith.constant 0 : index
    %c0_11 = arith.constant 0 : index
    %c0_12 = arith.constant 0 : index
    %6 = vector.load %arg0[%c0_10, %c0_11, %c0_12] : memref<2x16x64xbf16, #tpu.memory_space<vmem>>, vector<2x16x64xbf16>
    %7 = vector.shape_cast %6 : vector<2x16x64xbf16> to vector<32x64xbf16>
    %c0_13 = arith.constant 0 : index
    %c0_14 = arith.constant 0 : index
    %c0_15 = arith.constant 0 : index
    %8 = vector.load %arg10[%c0_13, %c0_14, %c0_15] : memref<2x18x64xbf16, #tpu.memory_space<vmem>>, vector<2x16x64xbf16>
    %9 = vector.shape_cast %8 : vector<2x16x64xbf16> to vector<32x64xbf16>
    %c0_16 = arith.constant 0 : index
    %c2 = arith.constant 2 : index
    %c0_17 = arith.constant 0 : index
    %10 = vector.load %arg10[%c0_16, %c2, %c0_17] : memref<2x18x64xbf16, #tpu.memory_space<vmem>>, vector<2x16x64xbf16>
    %11 = vector.shape_cast %10 : vector<2x16x64xbf16> to vector<32x64xbf16>
    %c0_18 = arith.constant 0 : index
    %c0_19 = arith.constant 0 : index
    %12 = vector.load %arg1[%c0_18, %c0_19] : memref<64x128xbf16, #tpu.memory_space<vmem>>, vector<64x128xbf16>
    %cst_20 = arith.constant dense<0.000000e+00> : vector<32x128xf32>
    %13 = tpu.matmul %9, %12, %cst_20 {dimension_numbers = #tpu.dot_dimension_numbers<[1], [0], [0], [1], [0, 0, 1, 1], [], []>} : vector<32x64xbf16>, vector<64x128xbf16>, vector<32x128xf32> -> vector<32x128xf32>
    %c0_21 = arith.constant 0 : index
    %c0_22 = arith.constant 0 : index
    %14 = vector.load %arg3[%c0_21, %c0_22] : memref<64x128xbf16, #tpu.memory_space<vmem>>, vector<64x128xbf16>
    %cst_23 = arith.constant dense<0.000000e+00> : vector<32x128xf32>
    %15 = tpu.matmul %11, %14, %cst_23 {dimension_numbers = #tpu.dot_dimension_numbers<[1], [0], [0], [1], [0, 0, 1, 1], [], []>} : vector<32x64xbf16>, vector<64x128xbf16>, vector<32x128xf32> -> vector<32x128xf32>
    %16 = arith.addf %13, %15 : vector<32x128xf32>
    %c0_24 = arith.constant 0 : index
    %c0_25 = arith.constant 0 : index
    %17 = vector.load %arg2[%c0_24, %c0_25] : memref<64x256xbf16, #tpu.memory_space<vmem>>, vector<64x256xbf16>
    %cst_26 = arith.constant dense<0.000000e+00> : vector<32x256xf32>
    %18 = tpu.matmul %7, %17, %cst_26 {dimension_numbers = #tpu.dot_dimension_numbers<[1], [0], [0], [1], [0, 0, 1, 1], [], []>} : vector<32x64xbf16>, vector<64x256xbf16>, vector<32x256xf32> -> vector<32x256xf32>
    %19 = vector.extract_strided_slice %18 {offsets = [0, 0], sizes = [32, 128], strides = [1, 1]} : vector<32x256xf32> to vector<32x128xf32>
    %20 = arith.addf %16, %19 : vector<32x128xf32>
    %21 = vector.extract_strided_slice %18 {offsets = [0, 128], sizes = [32, 128], strides = [1, 1]} : vector<32x256xf32> to vector<32x128xf32>
    %cst_27 = arith.constant dense<0.000000e+00> : vector<128xf32>
    %22 = vector.multi_reduction <add>, %21, %cst_27 [0] : vector<32x128xf32> to vector<128xf32>
    %23 = vector.shape_cast %22 : vector<128xf32> to vector<1x128xf32>
    %24 = arith.mulf %21, %21 : vector<32x128xf32>
    %cst_28 = arith.constant dense<0.000000e+00> : vector<128xf32>
    %25 = vector.multi_reduction <add>, %24, %cst_28 [0] : vector<32x128xf32> to vector<128xf32>
    %26 = vector.shape_cast %25 : vector<128xf32> to vector<1x128xf32>
    %27 = tpu.concatenate %23, %26 in 0 : vector<1x128xf32>, vector<1x128xf32> -> vector<2x128xf32>
    %c0_29 = arith.constant 0 : index
    %c0_30 = arith.constant 0 : index
    %28 = vector.load %arg7[%c0_29, %c0_30] : memref<128x128xf32, #tpu.memory_space<vmem>>, vector<128x128xf32>
    %cst_31 = arith.constant dense<0.000000e+00> : vector<2x128xf32>
    %29 = tpu.matmul %27, %28, %cst_31 {dimension_numbers = #tpu.dot_dimension_numbers<[1], [0], [0], [1], [0, 0, 1, 1], [], []>} : vector<2x128xf32>, vector<128x128xf32>, vector<2x128xf32> -> vector<2x128xf32>
    %30 = vector.extract_strided_slice %29 {offsets = [0, 0], sizes = [1, 128], strides = [1, 1]} : vector<2x128xf32> to vector<1x128xf32>
    %cst_32 = arith.constant 0.001953125 : f32
    %31 = vector.broadcast %cst_32 : f32 to vector<1x128xf32>
    %32 = arith.mulf %30, %31 : vector<1x128xf32>
    %33 = vector.extract_strided_slice %29 {offsets = [1, 0], sizes = [1, 128], strides = [1, 1]} : vector<2x128xf32> to vector<1x128xf32>
    %cst_33 = arith.constant 0.001953125 : f32
    %34 = vector.broadcast %cst_33 : f32 to vector<1x128xf32>
    %35 = arith.mulf %33, %34 : vector<1x128xf32>
    %36 = arith.mulf %32, %32 : vector<1x128xf32>
    %37 = arith.subf %35, %36 : vector<1x128xf32>
    %cst_34 = arith.constant 0.000000e+00 : f32
    %38 = vector.broadcast %cst_34 : f32 to vector<1x128xf32>
    %39 = arith.maximumf %37, %38 : vector<1x128xf32>
    %c4 = arith.constant 4 : index
    %c0_35 = arith.constant 0 : index
    %40 = vector.load %arg8[%c4, %c0_35] : memref<6x128xf32, #tpu.memory_space<vmem>>, vector<1x128xf32>
    %cst_36 = arith.constant 9.99999974E-6 : f32
    %41 = vector.broadcast %cst_36 : f32 to vector<1x128xf32>
    %42 = arith.addf %39, %41 : vector<1x128xf32>
    %43 = math.rsqrt %42 : vector<1x128xf32>
    %44 = arith.mulf %40, %43 : vector<1x128xf32>
    %c5 = arith.constant 5 : index
    %c0_37 = arith.constant 0 : index
    %45 = vector.load %arg8[%c5, %c0_37] : memref<6x128xf32, #tpu.memory_space<vmem>>, vector<1x128xf32>
    %46 = arith.mulf %32, %44 : vector<1x128xf32>
    %47 = arith.subf %45, %46 : vector<1x128xf32>
    %48 = vector.broadcast %44 : vector<1x128xf32> to vector<32x128xf32>
    %49 = arith.mulf %21, %48 : vector<32x128xf32>
    %50 = vector.broadcast %47 : vector<1x128xf32> to vector<32x128xf32>
    %51 = arith.addf %49, %50 : vector<32x128xf32>
    %cst_38 = arith.constant dense<0.000000e+00> : vector<128xf32>
    %52 = vector.multi_reduction <add>, %20, %cst_38 [0] : vector<32x128xf32> to vector<128xf32>
    %53 = vector.shape_cast %52 : vector<128xf32> to vector<1x128xf32>
    %54 = arith.mulf %20, %20 : vector<32x128xf32>
    %cst_39 = arith.constant dense<0.000000e+00> : vector<128xf32>
    %55 = vector.multi_reduction <add>, %54, %cst_39 [0] : vector<32x128xf32> to vector<128xf32>
    %56 = vector.shape_cast %55 : vector<128xf32> to vector<1x128xf32>
    %57 = tpu.concatenate %53, %56 in 0 : vector<1x128xf32>, vector<1x128xf32> -> vector<2x128xf32>
    %c0_40 = arith.constant 0 : index
    %c0_41 = arith.constant 0 : index
    %58 = vector.load %arg7[%c0_40, %c0_41] : memref<128x128xf32, #tpu.memory_space<vmem>>, vector<128x128xf32>
    %cst_42 = arith.constant dense<0.000000e+00> : vector<2x128xf32>
    %59 = tpu.matmul %57, %58, %cst_42 {dimension_numbers = #tpu.dot_dimension_numbers<[1], [0], [0], [1], [0, 0, 1, 1], [], []>} : vector<2x128xf32>, vector<128x128xf32>, vector<2x128xf32> -> vector<2x128xf32>
    %60 = vector.extract_strided_slice %59 {offsets = [0, 0], sizes = [1, 128], strides = [1, 1]} : vector<2x128xf32> to vector<1x128xf32>
    %cst_43 = arith.constant 0.001953125 : f32
    %61 = vector.broadcast %cst_43 : f32 to vector<1x128xf32>
    %62 = arith.mulf %60, %61 : vector<1x128xf32>
    %63 = vector.extract_strided_slice %59 {offsets = [1, 0], sizes = [1, 128], strides = [1, 1]} : vector<2x128xf32> to vector<1x128xf32>
    %cst_44 = arith.constant 0.001953125 : f32
    %64 = vector.broadcast %cst_44 : f32 to vector<1x128xf32>
    %65 = arith.mulf %63, %64 : vector<1x128xf32>
    %66 = arith.mulf %62, %62 : vector<1x128xf32>
    %67 = arith.subf %65, %66 : vector<1x128xf32>
    %cst_45 = arith.constant 0.000000e+00 : f32
    %68 = vector.broadcast %cst_45 : f32 to vector<1x128xf32>
    %69 = arith.maximumf %67, %68 : vector<1x128xf32>
    %c0_46 = arith.constant 0 : index
    %c0_47 = arith.constant 0 : index
    %70 = vector.load %arg8[%c0_46, %c0_47] : memref<6x128xf32, #tpu.memory_space<vmem>>, vector<1x128xf32>
    %cst_48 = arith.constant 9.99999974E-6 : f32
    %71 = vector.broadcast %cst_48 : f32 to vector<1x128xf32>
    %72 = arith.addf %69, %71 : vector<1x128xf32>
    %73 = math.rsqrt %72 : vector<1x128xf32>
    %74 = arith.mulf %70, %73 : vector<1x128xf32>
    %c1_49 = arith.constant 1 : index
    %c0_50 = arith.constant 0 : index
    %75 = vector.load %arg8[%c1_49, %c0_50] : memref<6x128xf32, #tpu.memory_space<vmem>>, vector<1x128xf32>
    %76 = arith.mulf %62, %74 : vector<1x128xf32>
    %77 = arith.subf %75, %76 : vector<1x128xf32>
    %78 = vector.broadcast %74 : vector<1x128xf32> to vector<32x128xf32>
    %79 = arith.mulf %20, %78 : vector<32x128xf32>
    %80 = vector.broadcast %77 : vector<1x128xf32> to vector<32x128xf32>
    %81 = arith.addf %79, %80 : vector<32x128xf32>
    %cst_51 = arith.constant 0.000000e+00 : f32
    %82 = vector.broadcast %cst_51 : f32 to vector<32x128xf32>
    %83 = arith.maximumf %81, %82 : vector<32x128xf32>
    %84 = arith.truncf %83 : vector<32x128xf32> to vector<32x128xbf16>
    %cst_52 = arith.constant 0.000000e+00 : bf16
    %85 = vector.broadcast %cst_52 : bf16 to vector<2x1x128xbf16>
    %c0_53 = arith.constant 0 : index
    %c0_54 = arith.constant 0 : index
    %c0_55 = arith.constant 0 : index
    %86 = vector.load %arg11[%c0_53, %c0_54, %c0_55] : memref<2x18x128xbf16, #tpu.memory_space<vmem>>, vector<2x1x128xbf16>
    tpu.vector_store %arg11[%c0_53, %c0_54, %c0_55], %85 {strides = array<i32>} : memref<2x18x128xbf16, #tpu.memory_space<vmem>>, vector<2x1x128xbf16>,
    %cst_56 = arith.constant 0.000000e+00 : bf16
    %87 = vector.broadcast %cst_56 : bf16 to vector<2x1x128xbf16>
    %c0_57 = arith.constant 0 : index
    %c17_58 = arith.constant 17 : index
    %c0_59 = arith.constant 0 : index
    %88 = vector.load %arg11[%c0_57, %c17_58, %c0_59] : memref<2x18x128xbf16, #tpu.memory_space<vmem>>, vector<2x1x128xbf16>
    tpu.vector_store %arg11[%c0_57, %c17_58, %c0_59], %87 {strides = array<i32>} : memref<2x18x128xbf16, #tpu.memory_space<vmem>>, vector<2x1x128xbf16>,
    %89 = vector.shape_cast %84 : vector<32x128xbf16> to vector<2x16x128xbf16>
    %c0_60 = arith.constant 0 : index
    %c1_61 = arith.constant 1 : index
    %c0_62 = arith.constant 0 : index
    %90 = vector.load %arg11[%c0_60, %c1_61, %c0_62] : memref<2x18x128xbf16, #tpu.memory_space<vmem>>, vector<2x16x128xbf16>
    tpu.vector_store %arg11[%c0_60, %c1_61, %c0_62], %89 {strides = array<i32>} : memref<2x18x128xbf16, #tpu.memory_space<vmem>>, vector<2x16x128xbf16>,
    %c0_63 = arith.constant 0 : index
    %c0_64 = arith.constant 0 : index
    %c0_65 = arith.constant 0 : index
    %91 = vector.load %arg11[%c0_63, %c0_64, %c0_65] : memref<2x18x128xbf16, #tpu.memory_space<vmem>>, vector<2x16x128xbf16>
    %92 = vector.shape_cast %91 : vector<2x16x128xbf16> to vector<32x128xbf16>
    %c0_66 = arith.constant 0 : index
    %c2_67 = arith.constant 2 : index
    %c0_68 = arith.constant 0 : index
    %93 = vector.load %arg11[%c0_66, %c2_67, %c0_68] : memref<2x18x128xbf16, #tpu.memory_space<vmem>>, vector<2x16x128xbf16>
    %94 = vector.shape_cast %93 : vector<2x16x128xbf16> to vector<32x128xbf16>
    %c0_69 = arith.constant 0 : index
    %c0_70 = arith.constant 0 : index
    %95 = vector.load %arg4[%c0_69, %c0_70] : memref<128x128xbf16, #tpu.memory_space<vmem>>, vector<128x128xbf16>
    %cst_71 = arith.constant dense<0.000000e+00> : vector<32x128xf32>
    %96 = tpu.matmul %92, %95, %cst_71 {dimension_numbers = #tpu.dot_dimension_numbers<[1], [0], [0], [1], [0, 0, 1, 1], [], []>} : vector<32x128xbf16>, vector<128x128xbf16>, vector<32x128xf32> -> vector<32x128xf32>
    %c0_72 = arith.constant 0 : index
    %c0_73 = arith.constant 0 : index
    %97 = vector.load %arg5[%c0_72, %c0_73] : memref<128x128xbf16, #tpu.memory_space<vmem>>, vector<128x128xbf16>
    %cst_74 = arith.constant dense<0.000000e+00> : vector<32x128xf32>
    %98 = tpu.matmul %84, %97, %cst_74 {dimension_numbers = #tpu.dot_dimension_numbers<[1], [0], [0], [1], [0, 0, 1, 1], [], []>} : vector<32x128xbf16>, vector<128x128xbf16>, vector<32x128xf32> -> vector<32x128xf32>
    %99 = arith.addf %96, %98 : vector<32x128xf32>
    %c0_75 = arith.constant 0 : index
    %c0_76 = arith.constant 0 : index
    %100 = vector.load %arg6[%c0_75, %c0_76] : memref<128x128xbf16, #tpu.memory_space<vmem>>, vector<128x128xbf16>
    %cst_77 = arith.constant dense<0.000000e+00> : vector<32x128xf32>
    %101 = tpu.matmul %94, %100, %cst_77 {dimension_numbers = #tpu.dot_dimension_numbers<[1], [0], [0], [1], [0, 0, 1, 1], [], []>} : vector<32x128xbf16>, vector<128x128xbf16>, vector<32x128xf32> -> vector<32x128xf32>
    %102 = arith.addf %99, %101 : vector<32x128xf32>
    %cst_78 = arith.constant dense<0.000000e+00> : vector<128xf32>
    %103 = vector.multi_reduction <add>, %102, %cst_78 [0] : vector<32x128xf32> to vector<128xf32>
    %104 = vector.shape_cast %103 : vector<128xf32> to vector<1x128xf32>
    %105 = arith.mulf %102, %102 : vector<32x128xf32>
    %cst_79 = arith.constant dense<0.000000e+00> : vector<128xf32>
    %106 = vector.multi_reduction <add>, %105, %cst_79 [0] : vector<32x128xf32> to vector<128xf32>
    %107 = vector.shape_cast %106 : vector<128xf32> to vector<1x128xf32>
    %108 = tpu.concatenate %104, %107 in 0 : vector<1x128xf32>, vector<1x128xf32> -> vector<2x128xf32>
    %c0_80 = arith.constant 0 : index
    %c0_81 = arith.constant 0 : index
    %109 = vector.load %arg7[%c0_80, %c0_81] : memref<128x128xf32, #tpu.memory_space<vmem>>, vector<128x128xf32>
    %cst_82 = arith.constant dense<0.000000e+00> : vector<2x128xf32>
    %110 = tpu.matmul %108, %109, %cst_82 {dimension_numbers = #tpu.dot_dimension_numbers<[1], [0], [0], [1], [0, 0, 1, 1], [], []>} : vector<2x128xf32>, vector<128x128xf32>, vector<2x128xf32> -> vector<2x128xf32>
    %111 = vector.extract_strided_slice %110 {offsets = [0, 0], sizes = [1, 128], strides = [1, 1]} : vector<2x128xf32> to vector<1x128xf32>
    %cst_83 = arith.constant 0.001953125 : f32
    %112 = vector.broadcast %cst_83 : f32 to vector<1x128xf32>
    %113 = arith.mulf %111, %112 : vector<1x128xf32>
    %114 = vector.extract_strided_slice %110 {offsets = [1, 0], sizes = [1, 128], strides = [1, 1]} : vector<2x128xf32> to vector<1x128xf32>
    %cst_84 = arith.constant 0.001953125 : f32
    %115 = vector.broadcast %cst_84 : f32 to vector<1x128xf32>
    %116 = arith.mulf %114, %115 : vector<1x128xf32>
    %117 = arith.mulf %113, %113 : vector<1x128xf32>
    %118 = arith.subf %116, %117 : vector<1x128xf32>
    %cst_85 = arith.constant 0.000000e+00 : f32
    %119 = vector.broadcast %cst_85 : f32 to vector<1x128xf32>
    %120 = arith.maximumf %118, %119 : vector<1x128xf32>
    %c2_86 = arith.constant 2 : index
    %c0_87 = arith.constant 0 : index
    %121 = vector.load %arg8[%c2_86, %c0_87] : memref<6x128xf32, #tpu.memory_space<vmem>>, vector<1x128xf32>
    %cst_88 = arith.constant 9.99999974E-6 : f32
    %122 = vector.broadcast %cst_88 : f32 to vector<1x128xf32>
    %123 = arith.addf %120, %122 : vector<1x128xf32>
    %124 = math.rsqrt %123 : vector<1x128xf32>
    %125 = arith.mulf %121, %124 : vector<1x128xf32>
    %c3 = arith.constant 3 : index
    %c0_89 = arith.constant 0 : index
    %126 = vector.load %arg8[%c3, %c0_89] : memref<6x128xf32, #tpu.memory_space<vmem>>, vector<1x128xf32>
    %127 = arith.mulf %113, %125 : vector<1x128xf32>
    %128 = arith.subf %126, %127 : vector<1x128xf32>
    %129 = vector.broadcast %125 : vector<1x128xf32> to vector<32x128xf32>
    %130 = arith.mulf %102, %129 : vector<32x128xf32>
    %131 = vector.broadcast %128 : vector<1x128xf32> to vector<32x128xf32>
    %132 = arith.addf %130, %131 : vector<32x128xf32>
    %133 = arith.addf %132, %51 : vector<32x128xf32>
    %cst_90 = arith.constant 0.000000e+00 : f32
    %134 = vector.broadcast %cst_90 : f32 to vector<32x128xf32>
    %135 = arith.maximumf %133, %134 : vector<32x128xf32>
    %c0_91 = arith.constant 0 : index
    %c0_92 = arith.constant 0 : index
    %136 = vector.load %arg9[%c0_91, %c0_92] : memref<32x128xf32, #tpu.memory_space<vmem>>, vector<32x128xf32>
    tpu.vector_store %arg9[%c0_91, %c0_92], %135 {strides = array<i32>} : memref<32x128xf32, #tpu.memory_space<vmem>>, vector<32x128xf32>,
    return
  }
}

</mosaic_0001>

<bundles_post_ra>
// kernel: tpu_custom_call.1
= control target key start
LH: loop header
LB: loop body
LE: loop exit
PB: predicated region body
PF: predicated region fallthrough
CT: control target
= control target key end

     0   :  { %14 = vsyncpa [#allocation5], 0  ;;  %s2138_s0 = inlined_call_operand.hbm [shape: bf16[2,16,64], index: 0, kind: input, shape index: {}]   ;;  %s2139_s1 = inlined_call_operand.hbm [shape: bf16[64,128], index: 1, kind: input, shape index: {}]   ;;  %s2140_s2 = inlined_call_operand.hbm [shape: bf16[64,256], index: 2, kind: input, shape index: {}]   ;;  %s2141_s3 = inlined_call_operand.hbm [shape: bf16[64,128], index: 3, kind: input, shape index: {}]   ;;  %s2142_s4 = inlined_call_operand.hbm [shape: bf16[128,128], index: 4, kind: input, shape index: {}]   ;;  %s2143_s5 = inlined_call_operand.hbm [shape: bf16[128,128], index: 5, kind: input, shape index: {}]   ;;  %s2144_s6 = inlined_call_operand.hbm [shape: bf16[128,128], index: 6, kind: input, shape index: {}]   ;;  %s2145_s7 = inlined_call_operand.hbm [shape: f32[128,128], index: 7, kind: input, shape index: {}]   ;;  %s2146_s8 = inlined_call_operand.hbm [shape: f32[6,128], index: 8, kind: input, shape index: {}]   ;;  %s2147_s9 = inlined_call_operand.hbm [shape: f32[32,128], index: 9, kind: output, shape index: {}]  }
   0x1   :  { %15 = vsyncpa [#allocation8], 0 }
   0x2   :  { %16 = vsyncpa [#allocation11], 0 }
   0x3   :  { %17 = vsyncpa [#allocation14], 0 }
   0x4   :  { %18 = vsyncpa [#allocation17], 0 }
   0x5   :  { %19 = vsyncpa [#allocation6], 0  ;;  %s37_s11 = sshll.u32 %s2139_s1, 4  ;;  %s1739_s12 = smov [#allocation7]   ;;  %s38_s11 = int_to_ptr.hbm [resolvable:$true] %s37_s11 }
   0x6   :  { %s39_s13 = sshll.u32 %s1739_s12, 4  ;;  %s63_s16 = sshll.u32 %s2141_s3, 4  ;;  %s40_s13 = int_to_ptr.vmem [resolvable:$true] %s39_s13  ;;  %s64_s16 = int_to_ptr.hbm [resolvable:$true] %s63_s16 }
   0x7   :  { %s1740_s17 = smov 64   ;;  %s1741_s18 = smov 4  }
   0x8   :  { %45 = dma.hbm_to_vmem [thread:$0]  %s38_s11, 512, %s40_s13, [#allocation8], %s1740_s17, %s1740_s17, %s1741_s18  }
   0x9   :  { %s1742_s19 = smov [#allocation10]   ;;  %s89_s1 = sshll.u32 %s2143_s5, 4  ;;  %s90_s1 = int_to_ptr.hbm [resolvable:$true] %s89_s1 }
   0xa   :  { %s65_s20 = sshll.u32 %s1742_s19, 4  ;;  %s1743_s3 = smov [#allocation13]   ;;  %s66_s20 = int_to_ptr.vmem [resolvable:$true] %s65_s20 }
   0xb   :  { %71 = dma.hbm_to_vmem [thread:$0]  %s64_s16, 512, %s66_s20, [#allocation11], %s1740_s17, %s1740_s17, %s1741_s18  }
   0xc   :  { %s91_s23 = sshll.u32 %s1743_s3, 4  ;;  %s115_s26 = sshll.u32 %s2145_s7, 4  ;;  %s92_s23 = int_to_ptr.vmem [resolvable:$true] %s91_s23  ;;  %s116_s26 = int_to_ptr.hbm [resolvable:$true] %s115_s26 }
   0xd   :  { %97 = dma.hbm_to_vmem [thread:$0]  %s90_s1, 1024, %s92_s23, [#allocation14], %s1740_s17, %s1740_s17, %s1741_s18  }
   0xe   :  { %s1744_s27 = smov [#allocation16]   ;;  %s24_s30 = sshll.u32 %s2138_s0, 4  ;;  %s25_s30 = int_to_ptr.hbm [resolvable:$true] %s24_s30 }
   0xf   :  { %s117_s5 = sshll.u32 %s1744_s27, 4  ;;  %s1745_s10 = smov 128   ;;  %s118_s5 = int_to_ptr.vmem [resolvable:$true] %s117_s5 }
  0x10   :  { %s1746_s11 = smov 8   ;;  %s50_s13 = sshll.u32 %s2140_s2, 4  ;;  %s51_s13 = int_to_ptr.hbm [resolvable:$true] %s50_s13 }
  0x11   :  { %123 = dma.hbm_to_vmem [thread:$0]  %s116_s26, 2048, %s118_s5, [#allocation17], %s1745_s10, %s1745_s10, %s1746_s11  }
  0x12   :  { %s1747_s14 = smov [#allocation4]   ;;  %s1748_s0 = smov [#allocation9]  }
  0x13   :  { %s26_s15 = sshll.u32 %s1747_s14, 4  ;;  %s52_s16 = sshll.u32 %s1748_s0, 4  ;;  %s27_s15 = int_to_ptr.vmem [resolvable:$true] %s26_s15  ;;  %s53_s16 = int_to_ptr.vmem [resolvable:$true] %s52_s16 }
  0x14   :  { %32 = dma.hbm_to_vmem [thread:$0]  %s25_s30, 256, %s27_s15, [#allocation5], %s1740_s17, %s1740_s17, %s1741_s18  }
  0x15   :  { %s76_s21 = sshll.u32 %s2142_s4, 4  ;;  %s102_s1 = sshll.u32 %s2144_s6, 4  ;;  %s77_s21 = int_to_ptr.hbm [resolvable:$true] %s76_s21  ;;  %s103_s1 = int_to_ptr.hbm [resolvable:$true] %s102_s1 }
  0x16   :  { %58 = dma.hbm_to_vmem [thread:$0]  %s51_s13, 1024, %s53_s16, [#allocation8], %s1745_s10, %s1745_s10, %s1746_s11  }
  0x17   :  { %s1749_s3 = smov [#allocation12]   ;;  %s1750_s24 = smov [#allocation15]  }
  0x18   :  { %s78_s23 = sshll.u32 %s1749_s3, 4  ;;  %s104_s4 = sshll.u32 %s1750_s24, 4  ;;  %s79_s23 = int_to_ptr.vmem [resolvable:$true] %s78_s23  ;;  %s105_s4 = int_to_ptr.vmem [resolvable:$true] %s104_s4 }
  0x19   :  { %84 = dma.hbm_to_vmem [thread:$0]  %s77_s21, 1024, %s79_s23, [#allocation11], %s1740_s17, %s1740_s17, %s1741_s18  }
  0x1a   :  { %s129_s27 = sshll.u32 %s2146_s8, 4  ;;  %s1751_s6 = smov [#allocation18]   ;;  %s130_s27 = int_to_ptr.hbm [resolvable:$true] %s129_s27 }
  0x1b   :  { %110 = dma.hbm_to_vmem [thread:$0]  %s103_s1, 1024, %s105_s4, [#allocation14], %s1740_s17, %s1740_s17, %s1741_s18  }
  0x1c   :  { %s131_s5 = sshll.u32 %s1751_s6, 4  ;;  %s132_s5 = int_to_ptr.vmem [resolvable:$true] %s131_s5 }
  0x1d   :  { %134 = dma.hbm_to_vmem [thread:$0]  %s130_s27, 128, %s132_s5, [#allocation17]  }
  0x1e   :  { %1727 = dma.done.wait [#allocation5], 256  }
  0x1f   :  { %1728 = vsyncadd [#allocation5], 4294967040 }
  0x20   :  { %1729 = dma.done.wait [#allocation8], 1536  }
  0x21   :  { %1730 = vsyncadd [#allocation8], 4294965760 }
  0x22   :  { %1731 = dma.done.wait [#allocation11], 1536  }
  0x23   :  { %1732 = vsyncadd [#allocation11], 4294965760 }
  0x24   :  { %1733 = dma.done.wait [#allocation14], 2048  }
  0x25   :  { %1734 = vsyncadd [#allocation14], 4294965248 }
  0x26   :  { %1735 = dma.done.wait [#allocation17], 2176  }
  0x27   :  { %1736 = vsyncadd [#allocation17], 4294965120  ;;  %vm173_vm0 = vsmask.f32 256  ;;  %v1297_v0 = vld [vmem:[#allocation9 + $0x30] sm:$0xf] }
  0x28   :  { %v1432_v1 = vld [vmem:[#allocation9 + $0x34] sm:$0xf0]  ;;  %vm172_vm1 = vcmask 516096   ;;  %v1431_v4 = vld [vmem:[#allocation9 + $0x34] sm:$0xf]  ;;  %v1418_v21 = vld [vmem:[#allocation7 + $0x8] sm:$0xff] }
  0x29   :  { %v1420_v2 = vld [vmem:[#allocation7 + $0x18] sm:$0xff]  ;;  %v1298_v3 = vor.u32 %v1432_v1, %v1297_v0  ;;  %v1289_v6 = vld [vmem:[#allocation9 + $0x20] sm:$0xf]  ;;  %v1430_v8 = vld [vmem:[#allocation9 + $0x24] sm:$0xf0]  ;;  %vm235_vm6 = vcmask 519168  }
  0x2a   :  { %v1299_v5 = vld [vmem:[#allocation9 + $0x38] sm:$0xf0]  ;;  %401 = vmatpush.bf16.msra.mxu1 %v1420_v2  ;;  %v1419_v9 = vld [vmem:[#allocation7 + $0x10] sm:$0xff]  ;;  %v1429_v10 = vld [vmem:[#allocation9 + $0x24] sm:$0xf]  ;;  %v1290_v11 = vor.u32 %v1430_v8, %v1289_v6  ;;  %vm333_vm8 = vcmask 523264  }
  0x2b   :  { %v1302_v7 = vor.u32 %v1431_v4, %v1299_v5  ;;  %484 = vmatpush.bf16.msra.mxu2 %v1298_v3  ;;  %v1291_v12 = vld [vmem:[#allocation9 + $0x28] sm:$0xf0]  ;;  %v1424_v13 = vld [vmem:[#allocation10 + $0x18] sm:$0xff]  ;;  %vm181_vm2 = vsmask.f32 7938  ;;  %vm1856_vm3 = vmand %vm172_vm1, %vm173_vm0  ;;  %vm270_vm10 = vcmask 1042432  }
  0x2c   :  { %v1294_v14 = vor.u32 %v1429_v10, %v1291_v12  ;;  %v1281_v15 = vld [vmem:[#allocation9 + $0x10] sm:$0xf]  ;;  %v1428_v16 = vld [vmem:[#allocation9 + $0x14] sm:$0xf0]  ;;  %344 = vmatpush.bf16.msra.mxu0 %v1424_v13  ;;  %v1427_v18 = vld [vmem:[#allocation9 + $0x14] sm:$0xf] }
  0x2d   :  { %503 = vmatpush.bf16.msra.mxu3 %v1302_v7  ;;  %v1283_v19 = vld [vmem:[#allocation9 + $0x18] sm:$0xf0]  ;;  %v1423_v20 = vld [vmem:[#allocation10 + $0x10] sm:$0xff]  ;;  %v1273_v22 = vld [vmem:[#allocation9] sm:$0xf]  ;;  %v1282_v24 = vor.u32 %v1428_v16, %v1281_v15  ;;  %vm271_vm11 = vcmask 1046532  }
  0x2e   :  { %402 = vmatpush.bf16.msra.mxu1 %v1419_v9  ;;  %vm1862_vm4 = vmand %vm172_vm1, %vm181_vm2  ;;  %vm193_vm5 = vsmask.f32 4368  ;;  %v1426_v25 = vld [vmem:[#allocation9 + $0x4] sm:$0xf0]  ;;  %v1425_v26 = vld [vmem:[#allocation9 + $0x4] sm:$0xf]  ;;  %v1286_v28 = vor.u32 %v1427_v18, %v1283_v19 }
  0x2f   :  { %485 = vmatpush.bf16.msra.mxu2 %v1290_v11  ;;  %v1275_v27 = vld [vmem:[#allocation9 + $0x8] sm:$0xf0]  ;;  %v175_v29 = vld [vmem:[#allocation2] sm:$0x1]  ;;  %v189_v30 = vld [vmem:[#allocation4] sm:$0xf]  ;;  %v1274_v40 = vor.u32 %v1426_v25, %v1273_v22 }
  0x30   :  { %v190_v31 = vld [vmem:[#allocation4 + $0x4] sm:$0xf]  ;;  %345 = vmatpush.bf16.msra.mxu0 %v1423_v20  ;;  %v1422_v32 = vld [vmem:[#allocation10 + $0x8] sm:$0xff]  ;;  %v176_v33 = vsel %vm1856_vm3, 0, %v175_v29  ;;  %v196_v34 = vshrl.u32 %v189_v30, 16  ;;  %v199_v35 = vshll.u32 %v189_v30, 16  ;;  %v1278_v46 = vor.u32 %v1425_v26, %v1275_v27  ;;  %vm1872_vm7 = vmor %vm173_vm0, %vm193_vm5 }
  0x31   :  { %504 = vmatpush.bf16.msra.mxu3 %v1294_v14  ;;  %v204_v36 = vshrl.u32 %v190_v31, 16  ;;  %v1417_v37 = vld [vmem:[#allocation7] sm:$0xff]  ;;  %177 = vst [vmem:[#allocation2] sm:$0x1] %v176_v33  ;;  %v207_v38 = vshll.u32 %v190_v31, 16  ;;  %v1413_v45 = vld [vmem:[#allocation4] sm:$0xff]  ;;  %vm1882_vm9 = vmand %vm235_vm6, %vm181_vm2 }
  0x32   :  { %403 = vmatpush.bf16.msra.mxu1 %v1418_v21  ;;  %v183_v39 = vld [vmem:[#allocation2 + $0x8] sm:$0x1]  ;;  %v198_v41 = vrot.slane %v196_v34, 7  ;;  %v178_v44 = vld [vmem:[#allocation2 + $0xc] sm:$0x1]  ;;  %v1421_v53 = vld [vmem:[#allocation10] sm:$0xff] }
  0x33   :  { %486 = vmatpush.bf16.msra.mxu2 %v1282_v24  ;;  %v206_v42 = vrot.slane %v204_v36, 7  ;;  %v184_v43 = vsel %vm1862_vm4, 0, %v183_v39  ;;  %v179_v48 = vsel %vm1856_vm3, 0, %v178_v44  ;;  %v191_v49 = vld [vmem:[#allocation4 + $0x8] sm:$0xf]  ;;  %vm1902_vm12 = vmor %vm270_vm10, %vm271_vm11  ;;  %v1924_v44 = vld [vmem:[#allocation16 + $0x70] sm:$0xff] }
  0x34   :  { %185 = vst [vmem:[#allocation2 + $0x8] sm:$0x1] %v184_v43  ;;  %346 = vmatpush.bf16.msra.mxu0 %v1422_v32  ;;  %v201_v50 = vor.u32 %v199_v35, %v198_v41  ;;  %v202_v51 = vrot.slane %v198_v41, 4  ;;  %v192_v54 = vld [vmem:[#allocation4 + $0xc] sm:$0xf]  ;;  %v213_v55 = vshrl.u32 %v191_v49, 16 }
  0x35   :  { %505 = vmatpush.bf16.msra.mxu3 %v1286_v28  ;;  %v209_v52 = vor.u32 %v207_v38, %v206_v42  ;;  %180 = vst [vmem:[#allocation2 + $0xc] sm:$0x1] %v179_v48  ;;  %v216_v56 = vshll.u32 %v191_v49, 16  ;;  %v221_v57 = vshrl.u32 %v192_v54, 16  ;;  %v224_v58 = vshll.u32 %v192_v54, 16  ;;  %v1414_v27 = vld [vmem:[#allocation4 + $0x8] sm:$0xff] }
  0x36   :  { %404 = vmatpush.bf16.msra.mxu1 %v1417_v37  ;;  %v186_v59 = vld [vmem:[#allocation2 + $0x14] sm:$0x1]  ;;  %v211_v63 = vrot.slane %v206_v42, 4  ;;  %v215_v0 = vrot.slane %v213_v55, 7  ;;  %v1920_v43 = vld [vmem:[#allocation16 + $0x78] sm:$0xff]  ;;  %vm544_vm13 = vcmask 1040384  }
  0x37   :  { %487 = vmatpush.bf16.msra.mxu2 %v1274_v40  ;;  %v210_v60 = vsel %vm1872_vm7, %v202_v51, %v209_v52  ;;  %v187_v62 = vsel %vm1862_vm4, 0, %v186_v59  ;;  %v223_v1 = vrot.slane %v221_v57, 7  ;;  %v1936_v48 = vld [vmem:[#allocation16 + $0x58] sm:$0xff]  ;;  %v1946_v51 = vld [vmem:[#allocation16 + $0x48] sm:$0xff]  ;;  %v1950_v52 = vld [vmem:[#allocation16 + $0x40] sm:$0xff]  ;;  %vm760_vm4 = vcmask 1043456  }
  0x38   :  { %241 = vst.msk [vmem:[#allocation2 + $0x4] sm:$0xf] %vm235_vm6, %v210_v60  ;;  %v237_v2 = vld [vmem:[#allocation2] sm:$0xf]  ;;  %347 = vmatpush.bf16.msra.mxu0 %v1421_v53  ;;  %v218_v4 = vor.u32 %v216_v56, %v215_v0  ;;  %v219_v5 = vrot.slane %v215_v0, 4  ;;  %v1956_v54 = vld [vmem:[#allocation16 + $0x38] sm:$0xff]  ;;  %vm1982_vm14 = vmand %vm544_vm13, %vm173_vm0 }
  0x39   :  { %506 = vmatpush.bf16.msra.mxu3 %v1278_v46  ;;  %188 = vst [vmem:[#allocation2 + $0x14] sm:$0x1] %v187_v62  ;;  %v238_v3 = vsel %vm1882_vm9, %v201_v50, %v237_v2  ;;  %v226_v6 = vor.u32 %v224_v58, %v223_v1  ;;  %v228_v11 = vrot.slane %v223_v1, 4  ;;  %v1932_v46 = vld [vmem:[#allocation16 + $0x60] sm:$0xff]  ;;  %v1942_v50 = vld [vmem:[#allocation16 + $0x50] sm:$0xff]  ;;  %v1968_v58 = vld [vmem:[#allocation16 + $0x28] sm:$0xff] }
  0x3a   :  { %1303 = vmatmul.msk.bf16.vlgmr.msra.gmra.mxu2 %vm333_vm8, %v1413_v45  ;;  %239 = vst [vmem:[#allocation2] sm:$0xf] %v238_v3  ;;  %641 = vmatpush.msrb.mxu1 %v1920_v43  ;;  %v1964_v57 = vld [vmem:[#allocation16 + $0x30] sm:$0xff]  ;;  %v1972_v60 = vld [vmem:[#allocation16 + $0x20] sm:$0xff]  ;;  %v1974_v61 = vld [vmem:[#allocation16 + $0x18] sm:$0xff]  ;;  %s1752_s8 = smov [#allocation19]  }
  0x3b   :  { %v242_v7 = vld [vmem:[#allocation2 + $0x8] sm:$0x1]  ;;  %v227_v9 = vsel %vm1872_vm7, %v219_v5, %v226_v6  ;;  %v1978_v62 = vld [vmem:[#allocation16 + $0x10] sm:$0xff]  ;;  %v707_v0 = vld [vmem:[#allocation3] sm:$0x1]  ;;  %s1198_s17 = sshll.u32 %s1752_s8, 4  ;;  %s1199_s17 = int_to_ptr.vmem [resolvable:$true] %s1198_s17 }
  0x3c   :  { %1305 = vmatmul.msk.bf16.vlgmr.msra.gmra.mxu3 %vm333_vm8, %v1413_v45  ;;  %v243_v8 = vsel %vm1856_vm3, %v211_v63, %v242_v7  ;;  %v245_v10 = vld [vmem:[#allocation2 + $0xc] sm:$0xf]  ;;  %248 = vst.msk [vmem:[#allocation2 + $0x10] sm:$0xf] %vm235_vm6, %v227_v9  ;;  %562 = vmatpush.msrb.mxu0 %v1920_v43  ;;  %v710_v1 = vld [vmem:[#allocation3 + $0xc] sm:$0x1]  ;;  %vm1988_vm15 = vmand %vm544_vm13, %vm181_vm2 }
  0x3d   :  { %244 = vst [vmem:[#allocation2 + $0x8] sm:$0x1] %v243_v8  ;;  %v246_v12 = vsel %vm1882_vm9, %v218_v4, %v245_v10  ;;  %642 = vmatpush.msrb.mxu1 %v1924_v44  ;;  %v1928_v45 = vld [vmem:[#allocation16 + $0x68] sm:$0xff]  ;;  %v708_v6 = vsel %vm1982_vm14, 0, %v707_v0  ;;  %v711_v7 = vsel %vm1982_vm14, 0, %v710_v1  ;;  %vm2079_vm5 = vmand %vm760_vm4, %vm181_vm2  ;;  %s1200_s29 = sshll.u32 %s2147_s9, 4  ;;  %s1201_s29 = int_to_ptr.hbm [resolvable:$true] %s1200_s29 }
  0x3e   :  { %247 = vst [vmem:[#allocation2 + $0xc] sm:$0xf] %v246_v12  ;;  %563 = vmatpush.msrb.mxu0 %v1924_v44  ;;  %v714_v8 = vld [vmem:[#allocation3 + $0x8] sm:$0x1]  ;;  %v717_v9 = vld [vmem:[#allocation3 + $0x14] sm:$0x1] }
  0x3f   :  { %v257_v13 = vld [vmem:[#allocation2 + $0x4] sm:$0xf]  ;;  %643 = vmatpush.msrb.mxu1 %v1928_v45  ;;  %709 = vst [vmem:[#allocation3] sm:$0x1] %v708_v6  ;;  %v715_v12 = vsel %vm1988_vm15, 0, %v714_v8 }
  0x40   :  { %v275_v14 = vrot.slane %v257_v13, 5  ;;  %v249_v15 = vld [vmem:[#allocation2 + $0x14] sm:$0x1]  ;;  %564 = vmatpush.msrb.mxu0 %v1928_v45  ;;  %v718_v13 = vsel %vm1988_vm15, 0, %v717_v9  ;;  %712 = vst [vmem:[#allocation3 + $0xc] sm:$0x1] %v711_v7 }
  0x41   :  { %v250_v16 = vsel %vm1856_vm3, %v228_v11, %v249_v15  ;;  %v1415_v18 = vld [vmem:[#allocation2] sm:$0xff]  ;;  %644 = vmatpush.msrb.mxu1 %v1932_v46  ;;  %v2004_v11 = vld [vmem:[#allocation16 + $0x8] sm:$0xff]  ;;  %716 = vst [vmem:[#allocation3 + $0x8] sm:$0x1] %v715_v12 }
  0x42   :  { %v260_v19 = vld [vmem:[#allocation2] sm:$0xe]  ;;  %251 = vst [vmem:[#allocation2 + $0x14] sm:$0x1] %v250_v16  ;;  %v277_v22 = vrot.slane %v275_v14, 4  ;;  %1261 = vmatmul.msk.bf16.vlgmr.msra.gmra.mxu1 %vm333_vm8, %v1415_v18  ;;  %565 = vmatpush.msrb.mxu0 %v1932_v46 }
  0x43   :  { %v1217_v21 = vrot.slane %v260_v19, 9  ;;  %v259_v17 = vld [vmem:[#allocation2 + $0x10] sm:$0xf]  ;;  %645 = vmatpush.msrb.mxu1 %v1936_v48  ;;  %v2014_v16 = vld [vmem:[#allocation16] sm:$0xff]  ;;  %719 = vst [vmem:[#allocation3 + $0x14] sm:$0x1] %v718_v13 }
  0x44   :  { %v261_v23 = vld [vmem:[#allocation2 + $0x8] sm:$0x1]  ;;  %v282_v30 = vrot.slane %v259_v17, 5  ;;  %566 = vmatpush.msrb.mxu0 %v1936_v48 }
  0x45   :  { %v276_v24 = vsel %vm1902_vm12, %v1217_v21, %v275_v14  ;;  %v278_v25 = vrot.slane %v261_v23, 5  ;;  %v262_v32 = vld [vmem:[#allocation2 + $0xc] sm:$0xe]  ;;  %646 = vmatpush.msrb.mxu1 %v1942_v50 }
  0x46   :  { %v303_v26 = vunpack.c.l.b16 %v276_v24  ;;  %v1218_v34 = vrot.slane %v262_v32, 9  ;;  %v284_v35 = vrot.slane %v282_v30, 4  ;;  %v1416_v37 = vld [vmem:[#allocation2 + $0xc] sm:$0xff]  ;;  %567 = vmatpush.msrb.mxu0 %v1942_v50 }
  0x47   :  { %v279_v28 = vsel %vm1902_vm12, %v277_v22, %v278_v25  ;;  %647 = vmatpush.msrb.mxu1 %v1946_v51 }
  0x48   :  { %v304_v29 = vunpack.c.l.b16 %v279_v28  ;;  %v283_v38 = vsel %vm1902_vm12, %v1218_v34, %v282_v30  ;;  %568 = vmatpush.msrb.mxu0 %v1946_v51 }
  0x49   :  { %v263_v33 = vld [vmem:[#allocation2 + $0x14] sm:$0x1]  ;;  %v305_v40 = vunpack.c.l.b16 %v283_v38  ;;  %648 = vmatpush.msrb.mxu1 %v1950_v52 }
  0x4a   :  { %v307_v31 = vpack.c.b16 %v304_v29, %v303_v26  ;;  %1304 = vmatmul.msk.bf16.gmra.mxu2 %vm333_vm8, %v1414_v27  ;;  %v285_v36 = vrot.slane %v263_v33, 5  ;;  %569 = vmatpush.msrb.mxu0 %v1950_v52 }
  0x4b   :  { %649 = vmatpush.msrb.mxu1 %v1956_v54 }
  0x4c   :  { %1306 = vmatmul.msk.bf16.gmra.mxu3 %vm333_vm8, %v1414_v27  ;;  %1235 = vmatmul.msk.bf16.vlgmr.msra.gmra.mxu0 %vm333_vm8, %v307_v31  ;;  %v286_v39 = vsel %vm1902_vm12, %v284_v35, %v285_v36 }
  0x4d   :  { %v306_v41 = vunpack.c.l.b16 %v286_v39  ;;  %570 = vmatpush.msrb.mxu0 %v1956_v54  ;;  %650 = vmatpush.msrb.mxu1 %v1964_v57 }
  0x4f   :  { %v308_v42 = vpack.c.b16 %v306_v41, %v305_v40  ;;  %571 = vmatpush.msrb.mxu0 %v1964_v57  ;;  %651 = vmatpush.msrb.mxu1 %v1968_v58 }
  0x51   :  { %572 = vmatpush.msrb.mxu0 %v1968_v58  ;;  %652 = vmatpush.msrb.mxu1 %v1972_v60 }
  0x52   :  { %1262 = vmatmul.msk.bf16.gmra.mxu1 %vm333_vm8, %v1416_v37 }
  0x53   :  { %573 = vmatpush.msrb.mxu0 %v1972_v60  ;;  %653 = vmatpush.msrb.mxu1 %v1974_v61 }
  0x55   :  { %574 = vmatpush.msrb.mxu0 %v1974_v61  ;;  %654 = vmatpush.msrb.mxu1 %v1978_v62 }
  0x57   :  { %575 = vmatpush.msrb.mxu0 %v1978_v62  ;;  %655 = vmatpush.msrb.mxu1 %v2004_v11 }
  0x59   :  { %576 = vmatpush.msrb.mxu0 %v2004_v11  ;;  %656 = vmatpush.msrb.mxu1 %v2014_v16 }
  0x5b   :  { %577 = vmatpush.msrb.mxu0 %v2014_v16  ;;  %1126 = vmatpush.msra.mxu1 %v1920_v43 }
  0x5c   :  { %1236 = vmatmul.msk.bf16.gmra.mxu0 %vm333_vm8, %v308_v42 }
  0x5d   :  { %1127 = vmatpush.msra.mxu1 %v1924_v44 }
  0x5f   :  { %1128 = vmatpush.msra.mxu1 %v1928_v45 }
  0x61   :  { %1129 = vmatpush.msra.mxu1 %v1932_v46 }
  0x63   :  { %1130 = vmatpush.msra.mxu1 %v1936_v48 }
  0x65   :  { %1131 = vmatpush.msra.mxu1 %v1942_v50 }
  0x67   :  { %1132 = vmatpush.msra.mxu1 %v1946_v51 }
  0x69   :  { %1133 = vmatpush.msra.mxu1 %v1950_v52 }
  0x6b   :  { %1134 = vmatpush.msra.mxu1 %v1956_v54 }
  0x6d   :  { %1135 = vmatpush.msra.mxu1 %v1964_v57 }
  0x6f   :  { %1136 = vmatpush.msra.mxu1 %v1968_v58 }
  0x71   :  { %1137 = vmatpush.msra.mxu1 %v1972_v60  ;;  %v1450_v60 = vld [vmem:[#allocation13 + $0x38] sm:$0xff] }
  0x72   :  { %896 = vmatpush.bf16.msrb.mxu2 %v1450_v60 }
  0x73   :  { %1138 = vmatpush.msra.mxu1 %v1974_v61  ;;  %v1448_v61 = vld [vmem:[#allocation13 + $0x28] sm:$0xff] }
  0x75   :  { %1139 = vmatpush.msra.mxu1 %v1978_v62  ;;  %v1442_v62 = vld [vmem:[#allocation12 + $0x38] sm:$0xff] }
  0x76   :  { %973 = vmatpush.bf16.msrb.mxu3 %v1442_v62 }
  0x77   :  { %1140 = vmatpush.msra.mxu1 %v2004_v11 }
  0x79   :  { %1141 = vmatpush.msra.mxu1 %v2014_v16  ;;  %v1446_v16 = vld [vmem:[#allocation13 + $0x18] sm:$0xff] }
  0xbd   :  { %v1958_v55 = vpop.f32.mrf.mxu2 }
  0xbf   :  { %v1940_v49 = vpop.f32.mrf.mxu3  ;;  %v1952_v53 = vpop.f32.mrf.mxu1 }
  0xc0   :  { %v531_v3 = vmul.f32 %v1940_v49, %v1940_v49 }
  0xc5   :  { %v491_v14 = vpop.f32.mrf.mxu2 }
  0xc7   :  { %v1962_v56 = vpop.f32.mrf.mxu3  ;;  %v408_v4 = vpop.f32.mrf.mxu1 }
  0xc8   :  { %v532_v5 = vmul.f32 %v1962_v56, %v1962_v56  ;;  %v522_v15 = vadd.f32 %v1962_v56, %v1940_v49 }
  0xc9   :  { %v349_v59 = vpop.f32.mrf.mxu0 }
  0xca   :  { %v535_v19 = vadd.f32 %v532_v5, %v531_v3  ;;  %v407_v32 = vadd.f32 %v1952_v53, %v349_v59 }
  0xcc   :  { %v2037_v39 = vadd.f32 %v1958_v55, %v407_v32  ;;  %v1445_v32 = vld [vmem:[#allocation13 + $0x10] sm:$0xff] }
  0xcd   :  { %v494_v28 = vpop.f32.mrf.mxu2 }
  0xce   :  { %v627_v53 = vmul.f32 %v2037_v39, %v2037_v39 }
  0xcf   :  { %v2002_v10 = vpop.f32.mrf.mxu3  ;;  %v411_v25 = vpop.f32.mrf.mxu1 }
  0xd0   :  { %v533_v21 = vmul.f32 %v2002_v10, %v2002_v10  ;;  %v523_v22 = vadd.f32 %v522_v15, %v2002_v10 }
  0xd1   :  { %v351_v18 = vpop.f32.mrf.mxu0 }
  0xd2   :  { %v536_v23 = vadd.f32 %v535_v19, %v533_v21  ;;  %v409_v17 = vadd.f32 %v408_v4, %v351_v18 }
  0xd4   :  { %v2033_v36 = vadd.f32 %v491_v14, %v409_v17 }
  0xd5   :  { %v496_v0 = vpop.f32.mrf.mxu2 }
  0xd6   :  { %v628_v43 = vmul.f32 %v2033_v36, %v2033_v36  ;;  %v618_v55 = vadd.f32 %v2033_v36, %v2037_v39 }
  0xd7   :  { %v2024_v24 = vpop.f32.mrf.mxu3  ;;  %v413_v44 = vpop.f32.mrf.mxu1 }
  0xd8   :  { %v524_v26 = vadd.f32 %v523_v22, %v2024_v24  ;;  %v534_v27 = vmul.f32 %v2024_v24, %v2024_v24  ;;  %v631_v51 = vadd.f32 %v628_v43, %v627_v53  ;;  %v1443_v43 = vld [vmem:[#allocation13] sm:$0xff] }
  0xd9   :  { %v354_v29 = vpop.f32.mrf.mxu0  ;;  %v1455_v53 = vld [vmem:[#allocation15 + $0x20] sm:$0xff] }
  0xda   :  { %v525_v30 = vrot.slane %v524_v26, 4  ;;  %v537_v31 = vadd.f32 %v536_v23, %v534_v27  ;;  %v412_v33 = vadd.f32 %v411_v25, %v354_v29  ;;  %v1447_v27 = vld [vmem:[#allocation13 + $0x20] sm:$0xff]  ;;  %v1441_v29 = vld [vmem:[#allocation12 + $0x30] sm:$0xff] }
  0xdb   :  { %974 = vmatpush.bf16.msrb.mxu3 %v1441_v29 }
  0xdc   :  { %v526_v34 = vadd.f32 %v525_v30, %v524_v26  ;;  %v538_v35 = vrot.slane %v537_v31, 4  ;;  %v2039_v40 = vadd.f32 %v494_v28, %v412_v33  ;;  %v1449_v26 = vld [vmem:[#allocation13 + $0x30] sm:$0xff]  ;;  %v1458_v33 = vld [vmem:[#allocation15 + $0x38] sm:$0xff] }
  0xdd   :  { %897 = vmatpush.bf16.msrb.mxu2 %v1449_v26  ;;  %1064 = vmatpush.bf16.msra.mxu0 %v1458_v33 }
  0xde   :  { %v527_v37 = vrot.slane %v526_v34, 2  ;;  %v539_v38 = vadd.f32 %v538_v35, %v537_v31  ;;  %v629_v50 = vmul.f32 %v2039_v40, %v2039_v40  ;;  %v619_v3 = vadd.f32 %v618_v55, %v2039_v40  ;;  %v1437_v55 = vld [vmem:[#allocation12 + $0x10] sm:$0xff] }
  0xe0   :  { %v528_v41 = vadd.f32 %v527_v37, %v526_v34  ;;  %v540_v42 = vrot.slane %v539_v38, 2  ;;  %v632_v6 = vadd.f32 %v631_v51, %v629_v50  ;;  %v1440_v34 = vld [vmem:[#allocation12 + $0x28] sm:$0xff]  ;;  %v1453_v51 = vld [vmem:[#allocation15 + $0x10] sm:$0xff] }
  0xe1   :  { %v356_v45 = vpop.f32.mrf.mxu0  ;;  %898 = vmatpush.bf16.msrb.mxu2 %v1448_v61  ;;  %v1444_v37 = vld [vmem:[#allocation13 + $0x8] sm:$0xff]  ;;  %975 = vmatpush.bf16.msrb.mxu3 %v1440_v34 }
  0xe2   :  { %v529_v46 = vrot.slane %v528_v41, 1  ;;  %v541_v48 = vadd.f32 %v540_v42, %v539_v38  ;;  %v414_v59 = vadd.f32 %v413_v44, %v356_v45  ;;  %v1457_v38 = vld [vmem:[#allocation15 + $0x30] sm:$0xff]  ;;  %v1456_v44 = vld [vmem:[#allocation15 + $0x28] sm:$0xff]  ;;  %v1438_v45 = vld [vmem:[#allocation12 + $0x18] sm:$0xff] }
  0xe3   :  { %1065 = vmatpush.bf16.msra.mxu0 %v1457_v38 }
  0xe4   :  { %v530_v1 = vadd.f32 %v529_v46, %v528_v41  ;;  %v542_v2 = vrot.slane %v541_v48, 1  ;;  %v2053_v4 = vadd.f32 %v496_v0, %v414_v59  ;;  %v1439_v41 = vld [vmem:[#allocation12 + $0x20] sm:$0xff]  ;;  %v1454_v0 = vld [vmem:[#allocation15 + $0x18] sm:$0xff] }
  0xe5   :  { %899 = vmatpush.bf16.msrb.mxu2 %v1447_v27  ;;  %976 = vmatpush.bf16.msrb.mxu3 %v1439_v41 }
  0xe6   :  { %v543_v5 = vadd.f32 %v542_v2, %v541_v48  ;;  %v620_v7 = vadd.f32 %v619_v3, %v2053_v4  ;;  %v630_v8 = vmul.f32 %v2053_v4, %v2053_v4  ;;  %v1435_v3 = vld [vmem:[#allocation12] sm:$0xff] }
  0xe7   :  { %1066 = vmatpush.bf16.msra.mxu0 %v1456_v44 }
  0xe8   :  { %v545_v52 = vsel %vm544_vm13, %v530_v1, %v543_v5  ;;  %v621_v9 = vrot.slane %v620_v7, 4  ;;  %v633_v12 = vadd.f32 %v632_v6, %v630_v8  ;;  %v1436_v1 = vld [vmem:[#allocation12 + $0x8] sm:$0xff]  ;;  %v668_v6 = vld [vmem:[#allocation18] sm:$0x1] }
  0xe9   :  { %578 = vmatmul.f32.vlgmr.msrb.gmra.mxu0 %v545_v52  ;;  %900 = vmatpush.bf16.msrb.mxu2 %v1446_v16  ;;  %v1452_v52 = vld [vmem:[#allocation15 + $0x8] sm:$0xff] }
  0xea   :  { %v622_v13 = vadd.f32 %v621_v9, %v620_v7  ;;  %v634_v14 = vrot.slane %v633_v12, 4  ;;  %977 = vmatpush.bf16.msrb.mxu3 %v1438_v45 }
  0xeb   :  { %1067 = vmatpush.bf16.msra.mxu0 %v1455_v53 }
  0xec   :  { %v623_v54 = vrot.slane %v622_v13, 2  ;;  %v635_v15 = vadd.f32 %v634_v14, %v633_v12  ;;  %v684_v12 = vld [vmem:[#allocation18 + $0x1] sm:$0x1] }
  0xed   :  { %901 = vmatpush.bf16.msrb.mxu2 %v1445_v32 }
  0xee   :  { %v624_v18 = vadd.f32 %v623_v54, %v622_v13  ;;  %v636_v19 = vrot.slane %v635_v15, 2  ;;  %978 = vmatpush.bf16.msrb.mxu3 %v1437_v55  ;;  %v1451_v54 = vld [vmem:[#allocation15] sm:$0xff] }
  0xef   :  { %1068 = vmatpush.bf16.msra.mxu0 %v1454_v0 }
  0xf0   :  { %v625_v57 = vrot.slane %v624_v18, 1  ;;  %v637_v21 = vadd.f32 %v636_v19, %v635_v15 }
  0xf1   :  { %902 = vmatpush.bf16.msrb.mxu2 %v1444_v37  ;;  %v762_v37 = vld [vmem:[#allocation3] sm:$0xf] }
  0xf2   :  { %v638_v22 = vrot.slane %v637_v21, 1  ;;  %v626_v58 = vadd.f32 %v625_v57, %v624_v18  ;;  %979 = vmatpush.bf16.msrb.mxu3 %v1436_v1 }
  0xf3   :  { %1069 = vmatpush.bf16.msra.mxu0 %v1453_v51 }
  0xf4   :  { %v639_v23 = vadd.f32 %v638_v22, %v637_v21 }
  0xf5   :  { %903 = vmatpush.bf16.msrb.mxu2 %v1443_v43 }
  0xf6   :  { %v640_v25 = vsel %vm544_vm13, %v626_v58, %v639_v23  ;;  %980 = vmatpush.bf16.msrb.mxu3 %v1435_v3  ;;  %v773_v3 = vld [vmem:[#allocation3 + $0x14] sm:$0x1] }
  0xf7   :  { %657 = vmatmul.f32.vlgmr.msrb.gmra.mxu1 %v640_v25  ;;  %1070 = vmatpush.bf16.msra.mxu0 %v1452_v52 }
  0xf9   :  { %1459 = vmatpush.bf16.msra.mxu2 %v1458_v33 }
  0xfb   :  { %1071 = vmatpush.bf16.msra.mxu0 %v1451_v54 }
  0xfd   :  { %1460 = vmatpush.bf16.msra.mxu2 %v1457_v38  ;;  %v766_v38 = vld [vmem:[#allocation3 + $0x8] sm:$0x1] }
 0x101   :  { %1461 = vmatpush.bf16.msra.mxu2 %v1456_v44 }
 0x105   :  { %1462 = vmatpush.bf16.msra.mxu2 %v1455_v53  ;;  %v769_v53 = vld [vmem:[#allocation3 + $0xc] sm:$0xf] }
 0x109   :  { %1463 = vmatpush.bf16.msra.mxu2 %v1454_v0 }
 0x10d   :  { %1464 = vmatpush.bf16.msra.mxu2 %v1453_v51 }
 0x111   :  { %1465 = vmatpush.bf16.msra.mxu2 %v1452_v52 }
 0x115   :  { %1466 = vmatpush.bf16.msra.mxu2 %v1451_v54 }
 0x174   :  { %v658_v17 = vpop.f32.mrf.mxu1 }
 0x175   :  { %v2068_v28 = vmul.f32 0.001953125, %v658_v17 }
 0x177   :  { %v662_v11 = vmul.f32 %v2068_v28, %v2068_v28 }
 0x179   :  { %v664_v30 = vrot.slane %v662_v11, 7 }
 0x17b   :  { %v666_v31 = vsub.f32 %v2068_v28, %v664_v30 }
 0x17d   :  { %v667_v35 = vmax.f32 %v666_v31, 0.0 }
 0x17f   :  { %v669_v42 = vadd.f32 1e-05, %v667_v35 }
 0x181   :  { %1481 = vrsqrt.f32 %v669_v42  ;;  %vm676_vm1 = vweird.f32 %v669_v42 }
 0x187   :  { %v1482_v46 = vpop.eup %1481 }
 0x188   :  { %v671_v48 = vmul.f32 %v1482_v46, %v669_v42  ;;  %vm677_vm0 = vweird.f32 %v1482_v46 }
 0x189   :  { %vm678_vm3 = vmor %vm676_vm1, %vm677_vm0 }
 0x18a   :  { %v672_v50 = vmul.f32 %v1482_v46, %v671_v48 }
 0x18c   :  { %v673_v59 = vmul.f32 0.5, %v672_v50 }
 0x18e   :  { %v674_v2 = vsub.f32 1.5, %v673_v59 }
 0x190   :  { %v675_v5 = vmul.f32 %v1482_v46, %v674_v2 }
 0x192   :  { %v679_v7 = vsel %vm678_vm3, %v1482_v46, %v675_v5 }
 0x193   :  { %v681_v8 = vrot.slane %v679_v7, 1 }
 0x195   :  { %v683_v9 = vmul.f32 %v681_v8, %v668_v6 }
 0x197   :  { %v685_v13 = vmul.f32 %v683_v9, %v2068_v28  ;;  %v687_v14 = vperm.slane %v683_v9, 0 }
 0x199   :  { %v686_v15 = vsub.f32 %v684_v12, %v685_v13  ;;  %v688_v18 = vmul.f32 %v687_v14, %v2037_v39  ;;  %v689_v57 = vmul.f32 %v687_v14, %v2033_v36  ;;  %v690_v21 = vmul.f32 %v687_v14, %v2039_v40 }
 0x19a   :  { %v691_v22 = vmul.f32 %v687_v14, %v2053_v4 }
 0x19b   :  { %v692_v19 = vperm.slane %v686_v15, 0 }
 0x19d   :  { %v693_v58 = vadd.f32 %v692_v19, %v688_v18  ;;  %v694_v23 = vadd.f32 %v692_v19, %v689_v57  ;;  %v695_v25 = vadd.f32 %v692_v19, %v690_v21  ;;  %v696_v60 = vadd.f32 %v692_v19, %v691_v22 }
 0x19f   :  { %v697_v26 = vmax.f32 %v693_v58, 0.0  ;;  %v698_v61 = vmax.f32 %v694_v23, 0.0  ;;  %v699_v27 = vmax.f32 %v695_v25, 0.0  ;;  %v700_v62 = vmax.f32 %v696_v60, 0.0 }
 0x1a1   :  { %v701_v17 = vpack.c.bf16 %v697_v26, %v697_v26  ;;  %v702_v28 = vpack.c.bf16 %v698_v61, %v698_v61  ;;  %v703_v39 = vpack.c.bf16 %v699_v27, %v699_v27  ;;  %v704_v11 = vpack.c.bf16 %v700_v62, %v700_v62 }
 0x1a3   :  { %v721_v16 = vshrl.u32 %v701_v17, 16  ;;  %v729_v36 = vshrl.u32 %v702_v28, 16  ;;  %v724_v40 = vshll.u32 %v701_v17, 16  ;;  %v840_v29 = vunpack.c.l.b16 %v701_v17 }
 0x1a4   :  { %v841_v4 = vunpack.c.l.b16 %v702_v28  ;;  %v738_v30 = vshrl.u32 %v703_v39, 16  ;;  %v732_v33 = vshll.u32 %v702_v28, 16  ;;  %v746_v34 = vshrl.u32 %v704_v11, 16 }
 0x1a5   :  { %v723_v31 = vrot.slane %v721_v16, 7  ;;  %v731_v32 = vrot.slane %v729_v36, 7  ;;  %v741_v43 = vshll.u32 %v703_v39, 16  ;;  %v749_v0 = vshll.u32 %v704_v11, 16 }
 0x1a6   :  { %v844_v41 = vpack.c.b16 %v841_v4, %v840_v29  ;;  %v740_v42 = vrot.slane %v738_v30, 7  ;;  %v748_v59 = vrot.slane %v746_v34, 7  ;;  %v842_v13 = vunpack.c.l.b16 %v703_v39 }
 0x1a7   :  { %v726_v44 = vor.u32 %v724_v40, %v723_v31  ;;  %v727_v45 = vrot.slane %v723_v31, 4  ;;  %v734_v46 = vor.u32 %v732_v33, %v731_v32  ;;  %v736_v48 = vrot.slane %v731_v32, 4  ;;  %v579_v31 = vpop.f32.mrf.mxu0 }
 0x1a8   :  { %904 = vmatmul.bf16.vlgmr.msrb.gmra.mxu2 %v844_v41  ;;  %v743_v55 = vor.u32 %v741_v43, %v740_v42  ;;  %v744_v50 = vrot.slane %v740_v42, 4  ;;  %v751_v5 = vor.u32 %v749_v0, %v748_v59  ;;  %v753_v6 = vrot.slane %v748_v59, 4 }
 0x1a9   :  { %v735_v1 = vsel %vm1872_vm7, %v727_v45, %v734_v46  ;;  %v763_v2 = vsel %vm2079_vm5, %v726_v44, %v762_v37  ;;  %v767_v51 = vsel %vm1982_vm14, %v736_v48, %v766_v38  ;;  %v843_v14 = vunpack.c.l.b16 %v704_v11 }
 0x1aa   :  { %764 = vst [vmem:[#allocation3] sm:$0xf] %v763_v2  ;;  %v770_v7 = vsel %vm2079_vm5, %v743_v55, %v769_v53  ;;  %v752_v8 = vsel %vm1872_vm7, %v744_v50, %v751_v5  ;;  %v774_v52 = vsel %vm1982_vm14, %v753_v6, %v773_v3 }
 0x1ab   :  { %765 = vst [vmem:[#allocation3 + $0x4] sm:$0xf] %v735_v1  ;;  %v845_v63 = vpack.c.b16 %v843_v14, %v842_v13 }
 0x1ac   :  { %768 = vst [vmem:[#allocation3 + $0x8] sm:$0x1] %v767_v51 }
 0x1ad   :  { %771 = vst [vmem:[#allocation3 + $0xc] sm:$0xf] %v770_v7 }
 0x1ae   :  { %772 = vst [vmem:[#allocation3 + $0x10] sm:$0xf] %v752_v8 }
 0x1af   :  { %775 = vst [vmem:[#allocation3 + $0x14] sm:$0x1] %v774_v52 }
 0x1b1   :  { %v780_v9 = vld [vmem:[#allocation3] sm:$0xe] }
 0x1b2   :  { %v1433_v12 = vld [vmem:[#allocation3] sm:$0xff]  ;;  %v1307_v15 = vrot.slane %v780_v9, 9 }
 0x1b3   :  { %v777_v54 = vld [vmem:[#allocation3 + $0x4] sm:$0xf]  ;;  %v781_v18 = vld [vmem:[#allocation3 + $0x8] sm:$0x1]  ;;  %981 = vmatmul.bf16.vlgmr.msrb.gmra.mxu3 %v1433_v12 }
 0x1b4   :  { %v792_v19 = vrot.slane %v777_v54, 5  ;;  %v795_v21 = vrot.slane %v781_v18, 5  ;;  %v782_v61 = vld [vmem:[#allocation3 + $0xc] sm:$0xe] }
 0x1b5   :  { %v779_v22 = vld [vmem:[#allocation3 + $0x10] sm:$0xf]  ;;  %v1308_v17 = vrot.slane %v782_v61, 9 }
 0x1b6   :  { %v793_v57 = vsel %vm1902_vm12, %v1307_v15, %v792_v19  ;;  %v794_v47 = vrot.slane %v792_v19, 4  ;;  %v799_v23 = vrot.slane %v779_v22, 5  ;;  %v783_v27 = vld [vmem:[#allocation3 + $0x14] sm:$0x1]  ;;  %v1434_v16 = vld [vmem:[#allocation3 + $0xc] sm:$0xff] }
 0x1b7   :  { %v1008_v25 = vunpack.c.l.b16 %v793_v57  ;;  %v802_v28 = vrot.slane %v783_v27, 5 }
 0x1b8   :  { %v796_v58 = vsel %vm1902_vm12, %v794_v47, %v795_v21  ;;  %909 = vmatmul.bf16.gmra.mxu2 %v845_v63  ;;  %v801_v62 = vrot.slane %v799_v23, 4  ;;  %v800_v11 = vsel %vm1902_vm12, %v1308_v17, %v799_v23 }
 0x1b9   :  { %v1009_v60 = vunpack.c.l.b16 %v796_v58  ;;  %v1010_v40 = vunpack.c.l.b16 %v800_v11  ;;  %v582_v58 = vmul.f32 0.001953125, %v579_v31 }
 0x1ba   :  { %v803_v39 = vsel %vm1902_vm12, %v801_v62, %v802_v28 }
 0x1bb   :  { %v1012_v26 = vpack.c.b16 %v1009_v60, %v1008_v25  ;;  %v1011_v36 = vunpack.c.l.b16 %v803_v39  ;;  %v583_v23 = vmul.f32 %v582_v58, %v582_v58 }
 0x1bd   :  { %1072 = vmatmul.bf16.vlgmr.msra.gmra.mxu0 %v1012_v26  ;;  %v1013_v29 = vpack.c.b16 %v1011_v36, %v1010_v40  ;;  %v585_v25 = vrot.slane %v583_v23, 7 }
 0x1bf   :  { %v587_v60 = vsub.f32 %v582_v58, %v585_v25 }
 0x1c1   :  { %v588_v26 = vmax.f32 %v587_v60, 0.0 }
 0x1c3   :  { %986 = vmatmul.bf16.gmra.mxu3 %v1434_v16  ;;  %v590_v61 = vadd.f32 1e-05, %v588_v26 }
 0x1c5   :  { %1483 = vrsqrt.f32 %v590_v61  ;;  %vm597_vm2 = vweird.f32 %v590_v61 }
 0x1c8   :  { %1077 = vmatmul.bf16.vlgmr.msra.gmra.mxu2 %v1013_v29 }
 0x1cb   :  { %v1484_v27 = vpop.eup %1483 }
 0x1cc   :  { %v592_v62 = vmul.f32 %v1484_v27, %v590_v61  ;;  %vm598_vm6 = vweird.f32 %v1484_v27 }
 0x1cd   :  { %vm599_vm7 = vmor %vm597_vm2, %vm598_vm6 }
 0x1ce   :  { %v593_v28 = vmul.f32 %v1484_v27, %v592_v62 }
 0x1d0   :  { %v594_v16 = vmul.f32 0.5, %v593_v28 }
 0x1d2   :  { %v595_v29 = vsub.f32 1.5, %v594_v16 }
 0x1d4   :  { %v596_v31 = vmul.f32 %v1484_v27, %v595_v29 }
 0x22b   :  { %v905_v4 = vpop.f32.mrf.mxu2 }
 0x233   :  { %v907_v30 = vpop.f32.mrf.mxu2 }
 0x236   :  { %v982_v32 = vpop.f32.mrf.mxu3 }
 0x237   :  { %v983_v43 = vadd.f32 %v982_v32, %v905_v4  ;;  %v600_v32 = vsel %vm599_vm7, %v1484_v27, %v596_v31 }
 0x23a   :  { %v1073_v34 = vpop.f32.mrf.mxu0 }
 0x23b   :  { %v910_v33 = vpop.f32.mrf.mxu2  ;;  %v2105_v46 = vadd.f32 %v1073_v34, %v983_v43  ;;  %v602_v34 = vrot.slane %v600_v32, 1 }
 0x23d   :  { %v1096_v50 = vmul.f32 %v2105_v46, %v2105_v46 }
 0x23e   :  { %v984_v35 = vpop.f32.mrf.mxu3 }
 0x23f   :  { %v985_v41 = vadd.f32 %v984_v35, %v907_v30 }
 0x242   :  { %v1075_v42 = vpop.f32.mrf.mxu0 }
 0x243   :  { %v912_v37 = vpop.f32.mrf.mxu2  ;;  %v2103_v44 = vadd.f32 %v1075_v42, %v985_v41 }
 0x245   :  { %v1097_v55 = vmul.f32 %v2103_v44, %v2103_v44  ;;  %v1087_v59 = vadd.f32 %v2103_v44, %v2105_v46 }
 0x246   :  { %v987_v38 = vpop.f32.mrf.mxu3 }
 0x247   :  { %v988_v45 = vadd.f32 %v987_v38, %v910_v33  ;;  %v1100_v51 = vadd.f32 %v1097_v55, %v1096_v50  ;;  %v1153_v55 = vld [vmem:[#allocation18 + $0x2] sm:$0x1] }
 0x24b   :  { %v1078_v20 = vpop.f32.mrf.mxu2 }
 0x24c   :  { %v2107_v48 = vadd.f32 %v1078_v20, %v988_v45 }
 0x24e   :  { %v989_v53 = vpop.f32.mrf.mxu3  ;;  %v1098_v0 = vmul.f32 %v2107_v48, %v2107_v48  ;;  %v1088_v3 = vadd.f32 %v1087_v59, %v2107_v48 }
 0x24f   :  { %v990_v1 = vadd.f32 %v989_v53, %v912_v37  ;;  %v589_v37 = vld [vmem:[#allocation18 + $0x4] sm:$0x1]  ;;  %v605_v53 = vld [vmem:[#allocation18 + $0x5] sm:$0x1] }
 0x250   :  { %v1101_v6 = vadd.f32 %v1100_v51, %v1098_v0  ;;  %v604_v41 = vmul.f32 %v602_v34, %v589_v37  ;;  %v1169_v51 = vld [vmem:[#allocation18 + $0x3] sm:$0x1] }
 0x252   :  { %v606_v20 = vmul.f32 %v604_v41, %v582_v58  ;;  %v608_v59 = vperm.slane %v604_v41, 0 }
 0x253   :  { %v1080_v2 = vpop.f32.mrf.mxu2 }
 0x254   :  { %v2118_v5 = vadd.f32 %v1080_v2, %v990_v1  ;;  %v607_v1 = vsub.f32 %v605_v53, %v606_v20 }
 0x256   :  { %v1089_v7 = vadd.f32 %v1088_v3, %v2118_v5  ;;  %v1099_v8 = vmul.f32 %v2118_v5, %v2118_v5  ;;  %v609_v3 = vmul.f32 %v608_v59, %v1940_v49 }
 0x258   :  { %v1090_v52 = vrot.slane %v1089_v7, 4  ;;  %v1102_v9 = vadd.f32 %v1101_v6, %v1099_v8  ;;  %v610_v8 = vmul.f32 %v608_v59, %v1962_v56 }
 0x25a   :  { %v1091_v12 = vadd.f32 %v1090_v52, %v1089_v7  ;;  %v1103_v13 = vrot.slane %v1102_v9, 4  ;;  %v611_v52 = vmul.f32 %v608_v59, %v2002_v10 }
 0x25c   :  { %v1092_v14 = vrot.slane %v1091_v12, 2  ;;  %v1104_v54 = vadd.f32 %v1103_v13, %v1102_v9  ;;  %v612_v9 = vmul.f32 %v608_v59, %v2024_v24 }
 0x25e   :  { %v1093_v15 = vadd.f32 %v1092_v14, %v1091_v12  ;;  %v1105_v18 = vrot.slane %v1104_v54, 2  ;;  %v613_v12 = vperm.slane %v607_v1, 0 }
 0x260   :  { %v1094_v19 = vrot.slane %v1093_v15, 1  ;;  %v1106_v57 = vadd.f32 %v1105_v18, %v1104_v54  ;;  %v614_v49 = vadd.f32 %v613_v12, %v609_v3 }
 0x262   :  { %v1107_v47 = vrot.slane %v1106_v57, 1  ;;  %v1095_v21 = vadd.f32 %v1094_v19, %v1093_v15 }
 0x264   :  { %v1108_v22 = vadd.f32 %v1107_v47, %v1106_v57  ;;  %v615_v57 = vadd.f32 %v613_v12, %v610_v8  ;;  %v616_v47 = vadd.f32 %v613_v12, %v611_v52 }
 0x266   :  { %v1109_v63 = vsel %vm544_vm13, %v1095_v21, %v1108_v22  ;;  %v617_v21 = vadd.f32 %v613_v12, %v612_v9 }
 0x267   :  { %1142 = vmatmul.f32.vlgmr.msra.gmra.mxu1 %v1109_v63 }
 0x2e4   :  { %v1143_v17 = vpop.f32.mrf.mxu1 }
 0x2e5   :  { %v1146_v39 = vmul.f32 0.001953125, %v1143_v17 }
 0x2e7   :  { %v1147_v11 = vmul.f32 %v1146_v39, %v1146_v39 }
 0x2e9   :  { %v1149_v36 = vrot.slane %v1147_v11, 7 }
 0x2eb   :  { %v1151_v40 = vsub.f32 %v1146_v39, %v1149_v36 }
 0x2ed   :  { %v1152_v4 = vmax.f32 %v1151_v40, 0.0 }
 0x2ef   :  { %v1154_v30 = vadd.f32 1e-05, %v1152_v4 }
 0x2f1   :  { %1485 = vrsqrt.f32 %v1154_v30  ;;  %vm1161_vm9 = vweird.f32 %v1154_v30 }
 0x2f7   :  { %v1486_v33 = vpop.eup %1485 }
 0x2f8   :  { %v1156_v35 = vmul.f32 %v1486_v33, %v1154_v30  ;;  %vm1162_vm8 = vweird.f32 %v1486_v33 }
 0x2f9   :  { %vm1163_vm10 = vmor %vm1161_vm9, %vm1162_vm8 }
 0x2fa   :  { %v1157_v38 = vmul.f32 %v1486_v33, %v1156_v35 }
 0x2fc   :  { %v1158_v42 = vmul.f32 0.5, %v1157_v38 }
 0x2fe   :  { %v1159_v43 = vsub.f32 1.5, %v1158_v42 }
 0x300   :  { %v1160_v45 = vmul.f32 %v1486_v33, %v1159_v43 }
 0x302   :  { %v1164_v50 = vsel %vm1163_vm10, %v1486_v33, %v1160_v45 }
 0x303   :  { %v1166_v0 = vrot.slane %v1164_v50, 1 }
 0x305   :  { %v1168_v2 = vmul.f32 %v1166_v0, %v1153_v55 }
 0x307   :  { %v1170_v6 = vmul.f32 %v1168_v2, %v1146_v39  ;;  %v1172_v7 = vperm.slane %v1168_v2, 0 }
 0x309   :  { %v1171_v13 = vsub.f32 %v1169_v51, %v1170_v6  ;;  %v1173_v14 = vmul.f32 %v1172_v7, %v2105_v46  ;;  %v1174_v54 = vmul.f32 %v1172_v7, %v2103_v44  ;;  %v1175_v15 = vmul.f32 %v1172_v7, %v2107_v48 }
 0x30a   :  { %v1176_v18 = vmul.f32 %v1172_v7, %v2118_v5 }
 0x30b   :  { %v1177_v19 = vperm.slane %v1171_v13, 0 }
 0x30d   :  { %v1178_v56 = vadd.f32 %v1177_v19, %v1173_v14  ;;  %v1179_v22 = vadd.f32 %v1177_v19, %v1174_v54  ;;  %v1180_v10 = vadd.f32 %v1177_v19, %v1175_v15  ;;  %v1181_v63 = vadd.f32 %v1177_v19, %v1176_v18 }
 0x30f   :  { %v1182_v24 = vadd.f32 %v1178_v56, %v614_v49  ;;  %v1183_v58 = vadd.f32 %v1179_v22, %v615_v57  ;;  %v1184_v23 = vadd.f32 %v1180_v10, %v616_v47  ;;  %v1185_v25 = vadd.f32 %v1181_v63, %v617_v21 }
 0x311   :  { %v1186_v46 = vmax.f32 %v1182_v24, 0.0  ;;  %v1187_v60 = vmax.f32 %v1183_v58, 0.0  ;;  %v1188_v44 = vmax.f32 %v1184_v23, 0.0  ;;  %v1189_v48 = vmax.f32 %v1185_v25, 0.0 }
 0x313   :  { %1190 = vst [vmem:[#allocation19] sm:$0xff] %v1186_v46 }
 0x314   :  { %1191 = vst [vmem:[#allocation19 + $0x8] sm:$0xff] %v1187_v60 }
 0x315   :  { %1192 = vst [vmem:[#allocation19 + $0x10] sm:$0xff] %v1188_v44 }
 0x316   :  { %1193 = vst [vmem:[#allocation19 + $0x18] sm:$0xff] %v1189_v48 }
 0x317   :  { %1206 = dma.vmem_to_hbm [thread:$0]  %s1199_s17, 512, %s1201_s29, [#allocation6], %s1745_s10, %s1745_s10, %s1746_s11  }
 0x318   :  { %1737 = dma.done.wait [#allocation6], 512  }
 0x319   :  { %1738 = vsyncadd [#allocation6], 4294966784 }
 0x31a   :  { %1211 = vsyncpa [#allocation5], 1 }
 0x31b   :  { %1212 = vsyncpa [#allocation8], 1 }
 0x31c   :  { %1213 = vsyncpa [#allocation11], 1 }
 0x31d   :  { %1214 = vsyncpa [#allocation14], 1 }
 0x31e   :  { %1215 = vsyncpa [#allocation17], 1 }
 0x31f   :  { %1216 = vsyncpa [#allocation6], 1 }

</bundles_post_ra>
